<compile_context>
chip_gen: v6e
topology: v6e:2x2x1
jax: 0.10.0
libtpu: 0.0.40
codegen_flags: <defaults>
</compile_context>

<pallas_src>
import functools
import math

import jax
import jax.numpy as jnp
from jax.experimental import pallas as pl
from jax.experimental.pallas import tpu as pltpu


# ---------------------------------------------------------------------------
# Kernels
# ---------------------------------------------------------------------------
def _stats_kernel(x_ref, sum_ref, sumsq_ref):
    """Pass 1 (training): accumulate per-column sum and sum-of-squares.

    The (1, Dw) outputs use the same block for every grid step, so they stay
    resident in VMEM and act as accumulators (init at i==0, written back at end).
    """
    i = pl.program_id(0)

    @pl.when(i == 0)
    def _():
        sum_ref[...] = jnp.zeros_like(sum_ref)
        sumsq_ref[...] = jnp.zeros_like(sumsq_ref)

    x = x_ref[...].astype(jnp.float32)                       # (TM, Dw)
    sum_ref[...] += jnp.sum(x, axis=0, keepdims=True)        # (1, Dw)
    sumsq_ref[...] += jnp.sum(x * x, axis=0, keepdims=True)  # (1, Dw)


def _normalize_kernel(x_ref, mean_ref, inv_std_ref, out_ref):
    """Pass 2 / eval: out = (x - mean) * inv_std  (division pre-hoisted)."""
    x = x_ref[...].astype(jnp.float32)                        # (TM, Dw)
    out_ref[...] = ((x - mean_ref[...]) * inv_std_ref[...]).astype(out_ref.dtype)


# ---------------------------------------------------------------------------
# Helpers
# ---------------------------------------------------------------------------
def _round_up(x, m):
    return (x + m - 1) // m * m


def _choose_row_tile(n_fold_rows, d_w):
    """Rows per block: ~2 MiB/buffer (f32), multiple of 8, capped at the array."""
    bytes_per_row = d_w * 4
    tm = max(8, (2 * 1024 * 1024) // bytes_per_row)
    tm = min(tm, _round_up(n_fold_rows, 8))
    tm = max(8, (tm // 8) * 8)
    return tm


# ---------------------------------------------------------------------------
# Module wrapper (Python-side state mirrors the nn.Module buffers)
# ---------------------------------------------------------------------------
class StandardNormalizer:
    def __init__(self, dim, agg_dims, ema_momentum: float = 0.1, eps: float = 0.001,
                 out_dtype=jnp.float32):
        self.dim = int(dim)
        self.agg_dims = tuple(agg_dims)
        self.ema_momentum = float(ema_momentum)
        self.ema_momentum_last = 0.0
        self.eps = float(eps)
        # out_dtype=jnp.float32 matches torch.autocast(dtype=float32); pass
        # jnp.bfloat16 to halve HBM write traffic if the consumer accepts it.
        self.out_dtype = out_dtype
        # deterministic buffer init, matching register_buffer in __init__
        self.mean = jnp.zeros((self.dim,), jnp.float32)
        self.std = jnp.ones((self.dim,), jnp.float32)
        self.training = True

    # -- pass 1: per-feature sum / sum-of-squares over all aggregated rows ----
    def _batch_stats(self, xw, tm, num_tiles, d_w):
        return pl.pallas_call(
            _stats_kernel,
            out_shape=(jax.ShapeDtypeStruct((1, d_w), jnp.float32),
                       jax.ShapeDtypeStruct((1, d_w), jnp.float32)),
            grid=(num_tiles,),
            in_specs=[pl.BlockSpec((tm, d_w), lambda i: (i, 0))],
            out_specs=(pl.BlockSpec((1, d_w), lambda i: (0, 0)),
                       pl.BlockSpec((1, d_w), lambda i: (0, 0))),
            compiler_params=pltpu.CompilerParams(
                dimension_semantics=("arbitrary",)),
        )(xw)

    # -- pass 2 / eval: elementwise normalize -----------------------------------
    def _normalize(self, xw, mean_w, inv_w, tm, num_tiles, d_w, n_rows_pad):
        return pl.pallas_call(
            _normalize_kernel,
            out_shape=jax.ShapeDtypeStruct((n_rows_pad, d_w), self.out_dtype),
            grid=(num_tiles,),
            in_specs=[pl.BlockSpec((tm, d_w), lambda i: (i, 0)),
                      pl.BlockSpec((1, d_w), lambda i: (0, 0)),
                      pl.BlockSpec((1, d_w), lambda i: (0, 0))],
            out_specs=pl.BlockSpec((tm, d_w), lambda i: (i, 0)),
            compiler_params=pltpu.CompilerParams(
                dimension_semantics=("parallel",)),
        )(xw, mean_w, inv_w)

    def __call__(self, x, ema_momentum=None):
        assert x.ndim == self.agg_dims[-1] + 2, \
            "Data is not compatible with aggregation dims"
        # supported case: aggregate over all dims except the last feature dim
        assert self.agg_dims == tuple(range(x.ndim - 1)), \
            "only agg_dims == all-leading-dims is supported"

        if ema_momentum is None:
            ema_momentum = self.ema_momentum
        self.ema_momentum_last = float(ema_momentum)

        orig_shape = x.shape
        D = self.dim
        n_rows = 1
        for s in orig_shape[:-1]:
            n_rows *= int(s)

        # ---- lane-dense folding: (N, D) -> (N/k, k*D), k*D % 128 == 0 ----
        k = 128 // math.gcd(D, 128)
        d_w = D * k
        n_fold = -(-n_rows // k)
        tm = _choose_row_tile(n_fold, d_w)
        n_fold_pad = _round_up(n_fold, tm)
        num_tiles = n_fold_pad // tm
        pad_rows = n_fold_pad * k - n_rows

        x2 = x.reshape(n_rows, D)
        if pad_rows:
            x2 = jnp.pad(x2, ((0, pad_rows), (0, 0)))  # zero rows: no effect on sums
        xw = x2.reshape(n_fold_pad, d_w)

        eval_mode = (not self.training) or ema_momentum == 0
        if eval_mode:
            mean_d = self.mean
            std_d = self.std
        else:
            assert n_rows >= 2, "training path needs at least 2 aggregated rows"
            # TODO(synk): concat_all_gather (torch.distributed all_gather) is a
            # multi-device ICI collective; single-device path implemented, which
            # matches torch when distributed is disabled.
            sum_w, sumsq_w = self._batch_stats(xw, tm, num_tiles, d_w)
            s = sum_w.reshape(k, D).sum(axis=0)       # (D,) — fold back, tiny op
            sq = sumsq_w.reshape(k, D).sum(axis=0)    # (D,)
            n = jnp.float32(n_rows)
            mean_d = s / n
            # unbiased estimator (ddof=1), matching torch.std
            var_d = jnp.maximum((sq - n * mean_d * mean_d) / (n - 1.0), 0.0)
            std_d = jnp.sqrt(var_d)
            # EMA buffer update (mirrors self.mean.copy_ / self.std.copy_)
            m = jnp.float32(ema_momentum)
            self.mean = self.mean * (1.0 - m) + mean_d * m
            self.std = self.std * (1.0 - m) + std_d * m

        # hoist the divide: single (D,) reciprocal, kernel only multiplies
        inv_d = 1.0 / jnp.maximum(std_d.astype(jnp.float32), self.eps)
        mean_w = jnp.tile(mean_d.astype(jnp.float32), k).reshape(1, d_w)
        inv_w = jnp.tile(inv_d, k).reshape(1, d_w)

        out = self._normalize(xw, mean_w, inv_w, tm, num_tiles, d_w, n_fold_pad)
        out = out.reshape(n_fold_pad * k, D)[:n_rows].reshape(orig_shape)
        return out


# ---------------------------------------------------------------------------
# Demo / correctness check
# ---------------------------------------------------------------------------
if __name__ == "__main__":
    B, S, D = 2, 8, 32
    key = jax.random.PRNGKey(0)
    x = jax.random.normal(key, (B, S, D), dtype=jnp.float32) * 2.0 + 0.5

    norm = StandardNormalizer(dim=D, agg_dims=(0, 1), ema_momentum=0.1, eps=1e-3)

    # ---- training forward (batch stats + EMA update) ----
    norm.training = True
    y_train = norm(x)
    y_train = jax.block_until_ready(y_train)

    # pure-JAX reference for the training path
    x2 = x.reshape(-1, D)
    ref_mean = x2.mean(axis=0)
    ref_std = jnp.sqrt(((x2 - ref_mean) ** 2).sum(axis=0) / (x2.shape[0] - 1))
    ref_train = ((x2 - ref_mean) / jnp.maximum(ref_std, 1e-3)).reshape(B, S, D)
    assert jnp.allclose(y_train, ref_train, atol=1e-5, rtol=1e-5)
    assert jnp.allclose(norm.mean, 0.9 * 0.0 + 0.1 * ref_mean, atol=1e-5)
    assert jnp.allclose(norm.std, 0.9 * 1.0 + 0.1 * ref_std, atol=1e-5)

    # ---- eval forward (uses EMA buffers) ----
    norm.training = False
    y_eval = norm(x)
    y_eval = jax.block_until_ready(y_eval)

    ref_eval = (x - norm.mean) / jnp.maximum(norm.std, 1e-3)
    assert jnp.allclose(y_eval, ref_eval, atol=1e-5, rtol=1e-5)

    print("KERNEL_OK")
</pallas_src>

<mosaic_0001>
module attributes {stable_mosaic.version = 11 : i64} {
  func.func @_stats_kernel(%arg0: i32, %arg1: memref<8x128xf32, #tpu.memory_space<vmem>>, %arg2: memref<1x128xf32, #tpu.memory_space<vmem>>, %arg3: memref<1x128xf32, #tpu.memory_space<vmem>>) attributes {dimension_semantics = [#tpu.dimension_semantics<arbitrary>], iteration_bounds = array<i64: 1>, scalar_prefetch = 0 : i64, scratch_operands = 0 : i64, tpu.core_type = #tpu.core_type<tc>, window_params = [{transform_indices = @transform_0, window_bounds = array<i64: 8, 128>}, {pipeline_mode = #tpu.pipeline_mode<synchronous>, transform_indices = @transform_1, window_bounds = array<i64: 1, 128>}, {pipeline_mode = #tpu.pipeline_mode<synchronous>, transform_indices = @transform_2, window_bounds = array<i64: 1, 128>}]} {
    %c0_i32 = arith.constant 0 : i32
    %0 = arith.cmpi eq, %arg0, %c0_i32 : i32
    %1 = arith.extui %0 : i1 to i32
    %c0_i32_0 = arith.constant 0 : i32
    %2 = arith.cmpi ne, %1, %c0_i32_0 : i32
    scf.if %2 {
      %cst_11 = arith.constant 0.000000e+00 : f32
      %15 = vector.broadcast %cst_11 : f32 to vector<1x128xf32>
      %c0_12 = arith.constant 0 : index
      %c0_13 = arith.constant 0 : index
      %16 = vector.load %arg2[%c0_12, %c0_13] : memref<1x128xf32, #tpu.memory_space<vmem>>, vector<1x128xf32>
      tpu.vector_store %arg2[%c0_12, %c0_13], %15 {strides = array<i32>} : memref<1x128xf32, #tpu.memory_space<vmem>>, vector<1x128xf32>,
      %cst_14 = arith.constant 0.000000e+00 : f32
      %17 = vector.broadcast %cst_14 : f32 to vector<1x128xf32>
      %c0_15 = arith.constant 0 : index
      %c0_16 = arith.constant 0 : index
      %18 = vector.load %arg3[%c0_15, %c0_16] : memref<1x128xf32, #tpu.memory_space<vmem>>, vector<1x128xf32>
      tpu.vector_store %arg3[%c0_15, %c0_16], %17 {strides = array<i32>} : memref<1x128xf32, #tpu.memory_space<vmem>>, vector<1x128xf32>,
    } else {
    }
    %c0 = arith.constant 0 : index
    %c0_1 = arith.constant 0 : index
    %3 = vector.load %arg1[%c0, %c0_1] : memref<8x128xf32, #tpu.memory_space<vmem>>, vector<8x128xf32>
    %c0_2 = arith.constant 0 : index
    %c0_3 = arith.constant 0 : index
    %4 = vector.load %arg2[%c0_2, %c0_3] : memref<1x128xf32, #tpu.memory_space<vmem>>, vector<1x128xf32>
    %cst = arith.constant dense<0.000000e+00> : vector<128xf32>
    %5 = vector.multi_reduction <add>, %3, %cst [0] : vector<8x128xf32> to vector<128xf32>
    %6 = vector.shape_cast %5 : vector<128xf32> to vector<1x128xf32>
    %7 = arith.addf %4, %6 : vector<1x128xf32>
    %c0_4 = arith.constant 0 : index
    %c0_5 = arith.constant 0 : index
    %8 = vector.load %arg2[%c0_4, %c0_5] : memref<1x128xf32, #tpu.memory_space<vmem>>, vector<1x128xf32>
    tpu.vector_store %arg2[%c0_4, %c0_5], %7 {strides = array<i32>} : memref<1x128xf32, #tpu.memory_space<vmem>>, vector<1x128xf32>,
    %c0_6 = arith.constant 0 : index
    %c0_7 = arith.constant 0 : index
    %9 = vector.load %arg3[%c0_6, %c0_7] : memref<1x128xf32, #tpu.memory_space<vmem>>, vector<1x128xf32>
    %10 = arith.mulf %3, %3 : vector<8x128xf32>
    %cst_8 = arith.constant dense<0.000000e+00> : vector<128xf32>
    %11 = vector.multi_reduction <add>, %10, %cst_8 [0] : vector<8x128xf32> to vector<128xf32>
    %12 = vector.shape_cast %11 : vector<128xf32> to vector<1x128xf32>
    %13 = arith.addf %9, %12 : vector<1x128xf32>
    %c0_9 = arith.constant 0 : index
    %c0_10 = arith.constant 0 : index
    %14 = vector.load %arg3[%c0_9, %c0_10] : memref<1x128xf32, #tpu.memory_space<vmem>>, vector<1x128xf32>
    tpu.vector_store %arg3[%c0_9, %c0_10], %13 {strides = array<i32>} : memref<1x128xf32, #tpu.memory_space<vmem>>, vector<1x128xf32>,
    return
  }
  func.func @transform_0(%arg0: i32) -> (i32, i32) {
    %c0_i32 = arith.constant 0 : i32
    %c0_i32_0 = arith.constant 0 : i32
    return %arg0, %c0_i32 : i32, i32
  }
  func.func @transform_1(%arg0: i32) -> (i32, i32) {
    %c0_i32 = arith.constant 0 : i32
    %c0_i32_0 = arith.constant 0 : i32
    %c0_i32_1 = arith.constant 0 : i32
    return %c0_i32, %c0_i32_0 : i32, i32
  }
  func.func @transform_2(%arg0: i32) -> (i32, i32) {
    %c0_i32 = arith.constant 0 : i32
    %c0_i32_0 = arith.constant 0 : i32
    %c0_i32_1 = arith.constant 0 : i32
    return %c0_i32, %c0_i32_0 : i32, i32
  }
}

</mosaic_0001>

<bundles_post_ra>
// kernel: tpu_custom_call.1
= control target key start
LH: loop header
LB: loop body
LE: loop exit
PB: predicated region body
PF: predicated region fallthrough
CT: control target
= control target key end

     0   :  { %8 = vsyncpa [#allocation3], 0  ;;  %s177_s0 = inlined_call_operand.hbm [shape: f32[8,128], index: 0, kind: input, shape index: {}]   ;;  %s178_s1 = inlined_call_operand.hbm [shape: f32[1,128], index: 1, kind: output, shape index: {0}]   ;;  %s179_s2 = inlined_call_operand.hbm [shape: f32[1,128], index: 2, kind: output, shape index: {1}]  }
   0x1   :  { %9 = vsyncpa [#allocation4], 0 }
   0x2   :  { %10 = vsyncpa [#allocation7], 0  ;;  %s149_s9 = smov [#allocation2]  }
   0x3   :  { %s17_s10 = sshll.u32 %s149_s9, 4  ;;  %s18_s10 = int_to_ptr.vmem [resolvable:$true] %s17_s10 }
   0x4   :  { %s91_s11 = scalar_lea.vmem %s18_s10, 128  ;;  %p96_p1 = scmp.lt.s32.totalorder %s18_s10, %s18_s10 }
   0x5   :  { %p92_p0 = scmp.ne.s32.totalorder %s18_s10, %s91_s11  ;;  %p97_p2 = scmp.lt.s32.totalorder %s91_s11, %s91_s11 }
   0x7   :  { %p98_p3 = por %p97_p2, %p96_p1 }
   0x9   :  { %p99_p4 = pnand %p98_p3, %p92_p0 }
   0xb   :  { %102 = shalt.err (!%p99_p4)
}
   0xc   :  { %20 = dma.hbm_to_vmem [thread:$0]  %s177_s0, 128, %s18_s10, [#allocation3]  }
   0xd   :  { %143 = dma.done.wait [#allocation3], 128  }
   0xe   :  { %144 = vsyncadd [#allocation3], 4294967168  ;;  %v150_v0 = vmov 0.0   ;;  %v30_v1 = vld [vmem:[#allocation2] sm:$0xff]  ;;  %s151_s14 = smov [#allocation5]   ;;  %s152_s0 = smov [#allocation6]  }
   0xf   :  { %28 = vst [vmem:[#allocation5] sm:$0x1] %v150_v0  ;;  %29 = vst [vmem:[#allocation6] sm:$0x1] %v150_v0  ;;  %v32_v2 = vrot.slane %v30_v1, 4  ;;  %v41_v3 = vmul.f32 %v30_v1, %v30_v1  ;;  %s56_s15 = sshll.u32 %s151_s14, 4  ;;  %s57_s15 = int_to_ptr.vmem [resolvable:$true] %s56_s15 }
  0x10   :  { %s66_s16 = sshll.u32 %s152_s0, 4  ;;  %s103_s17 = scalar_lea.vmem %s57_s15, 16  ;;  %s67_s16 = int_to_ptr.vmem [resolvable:$true] %s66_s16 }
  0x11   :  { %v33_v4 = vadd.f32 %v32_v2, %v30_v1  ;;  %v42_v5 = vrot.slane %v41_v3, 4  ;;  %p104_p5 = scmp.ne.s32.totalorder %s57_s15, %s103_s17  ;;  %s107_s18 = scalar_lea.vmem %s57_s15, 32 }
  0x12   :  { %p108_p6 = scmp.lt.s32.totalorder %s57_s15, %s57_s15  ;;  %p109_p7 = scmp.lt.s32.totalorder %s107_s18, %s103_s17 }
  0x13   :  { %v34_v6 = vrot.slane %v33_v4, 2  ;;  %v43_v7 = vadd.f32 %v42_v5, %v41_v3 }
  0x14   :  { %p110_p8 = por %p109_p7, %p108_p6 }
  0x15   :  { %v35_v8 = vadd.f32 %v34_v6, %v33_v4  ;;  %v44_v9 = vrot.slane %v43_v7, 2 }
  0x16   :  { %v31_v12 = vld [vmem:[#allocation5] sm:$0x1]  ;;  %v40_v15 = vld [vmem:[#allocation6] sm:$0x1]  ;;  %p111_p9 = pnand %p110_p8, %p104_p5 }
  0x17   :  { %v36_v10 = vrot.slane %v35_v8, 1  ;;  %v45_v11 = vadd.f32 %v44_v9, %v43_v7 }
  0x19   :  { %v37_v13 = vadd.f32 %v36_v10, %v35_v8  ;;  %v46_v14 = vrot.slane %v45_v11, 1 }
  0x1b   :  { %v38_v16 = vadd.f32 %v37_v13, %v31_v12  ;;  %v47_v17 = vadd.f32 %v46_v14, %v45_v11 }
  0x1d   :  { %39 = vst [vmem:[#allocation5] sm:$0x1] %v38_v16  ;;  %v48_v18 = vadd.f32 %v47_v17, %v40_v15 }
  0x1e   :  { %114 = shalt.err (!%p111_p9)
}
  0x1f   :  { %59 = dma.vmem_to_hbm [thread:$0]  %s57_s15, 16, %s178_s1, [#allocation4]   ;;  %49 = vst [vmem:[#allocation6] sm:$0x1] %v48_v18 }
  0x20   :  { %s123_s21 = scalar_lea.vmem %s67_s16, 16  ;;  %s127_s22 = scalar_lea.vmem %s67_s16, 32 }
  0x21   :  { %p124_p10 = scmp.ne.s32.totalorder %s67_s16, %s123_s21  ;;  %p128_p11 = scmp.lt.s32.totalorder %s67_s16, %s67_s16 }
  0x22   :  { %p129_p12 = scmp.lt.s32.totalorder %s127_s22, %s123_s21 }
  0x24   :  { %p130_p13 = por %p129_p12, %p128_p11 }
  0x26   :  { %p131_p0 = pnand %p130_p13, %p124_p10 }
  0x28   :  { %134 = shalt.err (!%p131_p0)
}
  0x29   :  { %69 = dma.vmem_to_hbm [thread:$0]  %s67_s16, 16, %s179_s2, [#allocation7]  }
  0x2a   :  { %145 = dma.done.wait [#allocation4], 16  }
  0x2b   :  { %146 = vsyncadd [#allocation4], 4294967280 }
  0x2c   :  { %147 = dma.done.wait [#allocation7], 16  }
  0x2d   :  { %148 = vsyncadd [#allocation7], 4294967280 }
  0x2e   :  { %76 = vsyncpa [#allocation3], 1 }
  0x2f   :  { %77 = vsyncpa [#allocation4], 1 }
  0x30   :  { %78 = vsyncpa [#allocation7], 1 }

</bundles_post_ra>
